<compile_context>
chip_gen: v7x
topology: tpu7x:2x2x1
jax: 0.10.0
libtpu: 0.0.40
codegen_flags: <defaults>
</compile_context>

<pallas_src>
import functools

import jax
import jax.numpy as jnp
from jax.experimental import pallas as pl
from jax.experimental.pallas import tpu as pltpu


def _attention_kernel(heads, dim_head, x_ref, wqkv_ref, wo_ref, b_ref, o_ref):
    inner = heads * dim_head

    x = x_ref[0]                                         # (n, dim), native dtype

    # Fused QKV projection: one MXU pass, output lanes = 3*inner.
    # (softmax scale already folded into the Q columns of wqkv in the wrapper)
    qkv = jnp.dot(x, wqkv_ref[...], preferred_element_type=jnp.float32)   # (n, 3*inner)
    q = qkv[:, 0 * inner:1 * inner].astype(x.dtype)
    k = qkv[:, 1 * inner:2 * inner].astype(x.dtype)
    v = qkv[:, 2 * inner:3 * inner].astype(x.dtype)

    # Per-head attention (static, unrolled over heads; heads live together in VMEM).
    outs = []
    for h in range(heads):
        sl = slice(h * dim_head, (h + 1) * dim_head)
        qh, kh, vh = q[:, sl], k[:, sl], v[:, sl]

        dots = jnp.dot(qh, kh.T, preferred_element_type=jnp.float32)      # (n, n)
        dots = dots - jnp.max(dots, axis=-1, keepdims=True)
        p = jnp.exp(dots)
        denom = jnp.sum(p, axis=-1, keepdims=True)                        # (n, 1)

        oh = jnp.dot(p.astype(vh.dtype), vh,
                     preferred_element_type=jnp.float32)                  # (n, d)
        # Deferred normalization on the small (n, d) tile; approx recip -> EUP.
        outs.append(oh * pl.reciprocal(denom, approx=True))

    out = jnp.concatenate(outs, axis=-1)                                  # (n, inner)

    # Single output projection, contraction depth = inner (full MXU depth).
    y = jnp.dot(out.astype(wo_ref.dtype), wo_ref[...],
                preferred_element_type=jnp.float32) + b_ref[...]
    o_ref[0] = y.astype(o_ref.dtype)


def attention_forward(x, w_qkv, w_out, b_out, heads, dim_head):
    """x: [b, n, dim];  w_qkv: [3*inner, dim];  w_out: [dim, inner];  b_out: [dim]."""
    b, n, dim = x.shape
    inner = heads * dim_head
    scale = dim_head ** (-0.5)

    # Wrapper-side weight prep (plain JAX, outside the hot loop).
    w_qkv_t = w_qkv.T.astype(x.dtype)                    # (dim, 3*inner), [Q | K | V]
    # Fold the softmax scale into the Q projection columns (free).
    w_fused = jnp.concatenate(
        [w_qkv_t[:, :inner] * scale, w_qkv_t[:, inner:]], axis=-1)        # (dim, 3*inner)
    wo = w_out.T.astype(x.dtype)                         # (inner, dim)
    bias = b_out.reshape(1, dim).astype(jnp.float32)     # (1, dim)

    kernel = functools.partial(_attention_kernel, heads, dim_head)

    return pl.pallas_call(
        kernel,
        out_shape=jax.ShapeDtypeStruct((b, n, dim), x.dtype),
        grid_spec=pltpu.PrefetchScalarGridSpec(
            num_scalar_prefetch=0,
            grid=(b,),
            in_specs=[
                pl.BlockSpec((1, n, dim), lambda i: (i, 0, 0)),          # x (per batch)
                pl.BlockSpec((dim, 3 * inner), lambda i: (0, 0)),        # fused Wqkv (resident)
                pl.BlockSpec((inner, dim), lambda i: (0, 0)),            # Wo (resident)
                pl.BlockSpec((1, dim), lambda i: (0, 0)),                # bias (resident)
            ],
            out_specs=pl.BlockSpec((1, n, dim), lambda i: (i, 0, 0)),
        ),
        compiler_params=pltpu.CompilerParams(
            dimension_semantics=("parallel",)),
    )(x, w_fused, wo, bias)


def attention_reference(x, w_qkv, w_out, b_out, heads, dim_head):
    """Plain-JAX reference reproducing the PyTorch forward (mask=None)."""
    b, n, dim = x.shape
    inner = heads * dim_head
    scale = dim_head ** (-0.5)
    qkv = x @ w_qkv.T                                    # (b, n, 3*inner)
    q, k, v = jnp.split(qkv, 3, axis=-1)

    def to_heads(t):
        return t.reshape(b, n, heads, dim_head).transpose(0, 2, 1, 3)    # (b,h,n,d)

    q, k, v = map(to_heads, (q, k, v))
    dots = jnp.einsum('bhid,bhjd->bhij', q, k) * scale
    attn = jax.nn.softmax(dots, axis=-1)
    out = jnp.einsum('bhij,bhjd->bhid', attn, v)
    out = out.transpose(0, 2, 1, 3).reshape(b, n, inner)
    return out @ w_out.T + b_out


if __name__ == "__main__":
    # Small shapes consistent with the module.
    batch, seq, dim = 2, 8, 32
    heads, dim_head = 4, 8
    inner = heads * dim_head

    key = jax.random.PRNGKey(0)
    k1, k2, k3, k4 = jax.random.split(key, 4)
    x = jax.random.normal(k1, (batch, seq, dim), dtype=jnp.float32)
    # Module shapes: to_qkv [3*inner, dim] (no bias), to_out [dim, inner] + bias [dim].
    w_qkv = jax.random.normal(k2, (inner * 3, dim), dtype=jnp.float32) * 0.05
    w_out = jax.random.normal(k3, (dim, inner), dtype=jnp.float32) * 0.05
    b_out = jax.random.normal(k4, (dim,), dtype=jnp.float32) * 0.05

    out = attention_forward(x, w_qkv, w_out, b_out, heads, dim_head)
    out = jax.block_until_ready(out)

    ref = attention_reference(x, w_qkv, w_out, b_out, heads, dim_head)
    assert out.shape == (batch, seq, dim)
    # approx=True reciprocal (EUP) in the softmax normalization -> ~1e-3 rel error.
    assert jnp.allclose(out, ref, atol=1e-2, rtol=1e-2), "mismatch vs reference"

    print("KERNEL_OK")
</pallas_src>

<mosaic_0001>
module attributes {stable_mosaic.version = 11 : i64} {
  func.func @_attention_kernel(%arg0: i32, %arg1: memref<1x8x32xf32, #tpu.memory_space<vmem>>, %arg2: memref<32x96xf32, #tpu.memory_space<vmem>>, %arg3: memref<32x32xf32, #tpu.memory_space<vmem>>, %arg4: memref<1x32xf32, #tpu.memory_space<vmem>>, %arg5: memref<1x8x32xf32, #tpu.memory_space<vmem>>) attributes {dimension_semantics = [#tpu.dimension_semantics<parallel>], iteration_bounds = array<i64: 2>, scalar_prefetch = 0 : i64, scratch_operands = 0 : i64, tpu.core_type = #tpu.core_type<tc>, window_params = [{transform_indices = @transform_0, window_bounds = array<i64: 1, 8, 32>}, {pipeline_mode = #tpu.pipeline_mode<synchronous>, transform_indices = @transform_1, window_bounds = array<i64: 32, 96>}, {pipeline_mode = #tpu.pipeline_mode<synchronous>, transform_indices = @transform_2, window_bounds = array<i64: 32, 32>}, {pipeline_mode = #tpu.pipeline_mode<synchronous>, transform_indices = @transform_3, window_bounds = array<i64: 1, 32>}, {transform_indices = @transform_4, window_bounds = array<i64: 1, 8, 32>}]} {
    %c0 = arith.constant 0 : index
    %c0_0 = arith.constant 0 : index
    %c0_1 = arith.constant 0 : index
    %0 = vector.load %arg1[%c0, %c0_0, %c0_1] : memref<1x8x32xf32, #tpu.memory_space<vmem>>, vector<1x8x32xf32>
    %1 = vector.shape_cast %0 : vector<1x8x32xf32> to vector<8x32xf32>
    %c0_2 = arith.constant 0 : index
    %c0_3 = arith.constant 0 : index
    %2 = vector.load %arg2[%c0_2, %c0_3] : memref<32x96xf32, #tpu.memory_space<vmem>>, vector<32x96xf32>
    %cst = arith.constant dense<0.000000e+00> : vector<8x96xf32>
    %3 = tpu.matmul %1, %2, %cst {dimension_numbers = #tpu.dot_dimension_numbers<[1], [0], [0], [1], [0, 0, 1, 1], [], []>} : vector<8x32xf32>, vector<32x96xf32>, vector<8x96xf32> -> vector<8x96xf32>
    %4 = vector.extract_strided_slice %3 {offsets = [0, 0], sizes = [8, 32], strides = [1, 1]} : vector<8x96xf32> to vector<8x32xf32>
    %5 = vector.extract_strided_slice %3 {offsets = [0, 32], sizes = [8, 32], strides = [1, 1]} : vector<8x96xf32> to vector<8x32xf32>
    %6 = vector.extract_strided_slice %3 {offsets = [0, 64], sizes = [8, 32], strides = [1, 1]} : vector<8x96xf32> to vector<8x32xf32>
    %7 = vector.extract_strided_slice %4 {offsets = [0, 0], sizes = [8, 8], strides = [1, 1]} : vector<8x32xf32> to vector<8x8xf32>
    %8 = vector.extract_strided_slice %5 {offsets = [0, 0], sizes = [8, 8], strides = [1, 1]} : vector<8x32xf32> to vector<8x8xf32>
    %9 = vector.extract_strided_slice %6 {offsets = [0, 0], sizes = [8, 8], strides = [1, 1]} : vector<8x32xf32> to vector<8x8xf32>
    %10 = tpu.transpose %8, [1, 0] : vector<8x8xf32> -> vector<8x8xf32>
    %cst_4 = arith.constant dense<0.000000e+00> : vector<8x8xf32>
    %11 = tpu.matmul %7, %10, %cst_4 {dimension_numbers = #tpu.dot_dimension_numbers<[1], [0], [0], [1], [0, 0, 1, 1], [], []>} : vector<8x8xf32>, vector<8x8xf32>, vector<8x8xf32> -> vector<8x8xf32>
    %cst_5 = arith.constant dense<0xFF800000> : vector<8xf32>
    %12 = vector.multi_reduction <maximumf>, %11, %cst_5 [1] : vector<8x8xf32> to vector<8xf32>
    %13 = vector.shape_cast %12 : vector<8xf32> to vector<8x1xf32>
    %14 = vector.broadcast %13 : vector<8x1xf32> to vector<8x8xf32>
    %15 = arith.subf %11, %14 : vector<8x8xf32>
    %16 = math.exp %15 : vector<8x8xf32>
    %cst_6 = arith.constant dense<0.000000e+00> : vector<8xf32>
    %17 = vector.multi_reduction <add>, %16, %cst_6 [1] : vector<8x8xf32> to vector<8xf32>
    %18 = vector.shape_cast %17 : vector<8xf32> to vector<8x1xf32>
    %cst_7 = arith.constant dense<0.000000e+00> : vector<8x8xf32>
    %19 = tpu.matmul %16, %9, %cst_7 {dimension_numbers = #tpu.dot_dimension_numbers<[1], [0], [0], [1], [0, 0, 1, 1], [], []>} : vector<8x8xf32>, vector<8x8xf32>, vector<8x8xf32> -> vector<8x8xf32>
    %20 = tpu.reciprocal %18 {approx = true} : vector<8x1xf32> -> vector<8x1xf32>
    %21 = vector.broadcast %20 : vector<8x1xf32> to vector<8x8xf32>
    %22 = arith.mulf %19, %21 : vector<8x8xf32>
    %23 = vector.extract_strided_slice %4 {offsets = [0, 8], sizes = [8, 8], strides = [1, 1]} : vector<8x32xf32> to vector<8x8xf32>
    %24 = vector.extract_strided_slice %5 {offsets = [0, 8], sizes = [8, 8], strides = [1, 1]} : vector<8x32xf32> to vector<8x8xf32>
    %25 = vector.extract_strided_slice %6 {offsets = [0, 8], sizes = [8, 8], strides = [1, 1]} : vector<8x32xf32> to vector<8x8xf32>
    %26 = tpu.transpose %24, [1, 0] : vector<8x8xf32> -> vector<8x8xf32>
    %cst_8 = arith.constant dense<0.000000e+00> : vector<8x8xf32>
    %27 = tpu.matmul %23, %26, %cst_8 {dimension_numbers = #tpu.dot_dimension_numbers<[1], [0], [0], [1], [0, 0, 1, 1], [], []>} : vector<8x8xf32>, vector<8x8xf32>, vector<8x8xf32> -> vector<8x8xf32>
    %cst_9 = arith.constant dense<0xFF800000> : vector<8xf32>
    %28 = vector.multi_reduction <maximumf>, %27, %cst_9 [1] : vector<8x8xf32> to vector<8xf32>
    %29 = vector.shape_cast %28 : vector<8xf32> to vector<8x1xf32>
    %30 = vector.broadcast %29 : vector<8x1xf32> to vector<8x8xf32>
    %31 = arith.subf %27, %30 : vector<8x8xf32>
    %32 = math.exp %31 : vector<8x8xf32>
    %cst_10 = arith.constant dense<0.000000e+00> : vector<8xf32>
    %33 = vector.multi_reduction <add>, %32, %cst_10 [1] : vector<8x8xf32> to vector<8xf32>
    %34 = vector.shape_cast %33 : vector<8xf32> to vector<8x1xf32>
    %cst_11 = arith.constant dense<0.000000e+00> : vector<8x8xf32>
    %35 = tpu.matmul %32, %25, %cst_11 {dimension_numbers = #tpu.dot_dimension_numbers<[1], [0], [0], [1], [0, 0, 1, 1], [], []>} : vector<8x8xf32>, vector<8x8xf32>, vector<8x8xf32> -> vector<8x8xf32>
    %36 = tpu.reciprocal %34 {approx = true} : vector<8x1xf32> -> vector<8x1xf32>
    %37 = vector.broadcast %36 : vector<8x1xf32> to vector<8x8xf32>
    %38 = arith.mulf %35, %37 : vector<8x8xf32>
    %39 = vector.extract_strided_slice %4 {offsets = [0, 16], sizes = [8, 8], strides = [1, 1]} : vector<8x32xf32> to vector<8x8xf32>
    %40 = vector.extract_strided_slice %5 {offsets = [0, 16], sizes = [8, 8], strides = [1, 1]} : vector<8x32xf32> to vector<8x8xf32>
    %41 = vector.extract_strided_slice %6 {offsets = [0, 16], sizes = [8, 8], strides = [1, 1]} : vector<8x32xf32> to vector<8x8xf32>
    %42 = tpu.transpose %40, [1, 0] : vector<8x8xf32> -> vector<8x8xf32>
    %cst_12 = arith.constant dense<0.000000e+00> : vector<8x8xf32>
    %43 = tpu.matmul %39, %42, %cst_12 {dimension_numbers = #tpu.dot_dimension_numbers<[1], [0], [0], [1], [0, 0, 1, 1], [], []>} : vector<8x8xf32>, vector<8x8xf32>, vector<8x8xf32> -> vector<8x8xf32>
    %cst_13 = arith.constant dense<0xFF800000> : vector<8xf32>
    %44 = vector.multi_reduction <maximumf>, %43, %cst_13 [1] : vector<8x8xf32> to vector<8xf32>
    %45 = vector.shape_cast %44 : vector<8xf32> to vector<8x1xf32>
    %46 = vector.broadcast %45 : vector<8x1xf32> to vector<8x8xf32>
    %47 = arith.subf %43, %46 : vector<8x8xf32>
    %48 = math.exp %47 : vector<8x8xf32>
    %cst_14 = arith.constant dense<0.000000e+00> : vector<8xf32>
    %49 = vector.multi_reduction <add>, %48, %cst_14 [1] : vector<8x8xf32> to vector<8xf32>
    %50 = vector.shape_cast %49 : vector<8xf32> to vector<8x1xf32>
    %cst_15 = arith.constant dense<0.000000e+00> : vector<8x8xf32>
    %51 = tpu.matmul %48, %41, %cst_15 {dimension_numbers = #tpu.dot_dimension_numbers<[1], [0], [0], [1], [0, 0, 1, 1], [], []>} : vector<8x8xf32>, vector<8x8xf32>, vector<8x8xf32> -> vector<8x8xf32>
    %52 = tpu.reciprocal %50 {approx = true} : vector<8x1xf32> -> vector<8x1xf32>
    %53 = vector.broadcast %52 : vector<8x1xf32> to vector<8x8xf32>
    %54 = arith.mulf %51, %53 : vector<8x8xf32>
    %55 = vector.extract_strided_slice %4 {offsets = [0, 24], sizes = [8, 8], strides = [1, 1]} : vector<8x32xf32> to vector<8x8xf32>
    %56 = vector.extract_strided_slice %5 {offsets = [0, 24], sizes = [8, 8], strides = [1, 1]} : vector<8x32xf32> to vector<8x8xf32>
    %57 = vector.extract_strided_slice %6 {offsets = [0, 24], sizes = [8, 8], strides = [1, 1]} : vector<8x32xf32> to vector<8x8xf32>
    %58 = tpu.transpose %56, [1, 0] : vector<8x8xf32> -> vector<8x8xf32>
    %cst_16 = arith.constant dense<0.000000e+00> : vector<8x8xf32>
    %59 = tpu.matmul %55, %58, %cst_16 {dimension_numbers = #tpu.dot_dimension_numbers<[1], [0], [0], [1], [0, 0, 1, 1], [], []>} : vector<8x8xf32>, vector<8x8xf32>, vector<8x8xf32> -> vector<8x8xf32>
    %cst_17 = arith.constant dense<0xFF800000> : vector<8xf32>
    %60 = vector.multi_reduction <maximumf>, %59, %cst_17 [1] : vector<8x8xf32> to vector<8xf32>
    %61 = vector.shape_cast %60 : vector<8xf32> to vector<8x1xf32>
    %62 = vector.broadcast %61 : vector<8x1xf32> to vector<8x8xf32>
    %63 = arith.subf %59, %62 : vector<8x8xf32>
    %64 = math.exp %63 : vector<8x8xf32>
    %cst_18 = arith.constant dense<0.000000e+00> : vector<8xf32>
    %65 = vector.multi_reduction <add>, %64, %cst_18 [1] : vector<8x8xf32> to vector<8xf32>
    %66 = vector.shape_cast %65 : vector<8xf32> to vector<8x1xf32>
    %cst_19 = arith.constant dense<0.000000e+00> : vector<8x8xf32>
    %67 = tpu.matmul %64, %57, %cst_19 {dimension_numbers = #tpu.dot_dimension_numbers<[1], [0], [0], [1], [0, 0, 1, 1], [], []>} : vector<8x8xf32>, vector<8x8xf32>, vector<8x8xf32> -> vector<8x8xf32>
    %68 = tpu.reciprocal %66 {approx = true} : vector<8x1xf32> -> vector<8x1xf32>
    %69 = vector.broadcast %68 : vector<8x1xf32> to vector<8x8xf32>
    %70 = arith.mulf %67, %69 : vector<8x8xf32>
    %71 = tpu.concatenate %22, %38, %54, %70 in 1 : vector<8x8xf32>, vector<8x8xf32>, vector<8x8xf32>, vector<8x8xf32> -> vector<8x32xf32>
    %c0_20 = arith.constant 0 : index
    %c0_21 = arith.constant 0 : index
    %72 = vector.load %arg3[%c0_20, %c0_21] : memref<32x32xf32, #tpu.memory_space<vmem>>, vector<32x32xf32>
    %cst_22 = arith.constant dense<0.000000e+00> : vector<8x32xf32>
    %73 = tpu.matmul %71, %72, %cst_22 {dimension_numbers = #tpu.dot_dimension_numbers<[1], [0], [0], [1], [0, 0, 1, 1], [], []>} : vector<8x32xf32>, vector<32x32xf32>, vector<8x32xf32> -> vector<8x32xf32>
    %c0_23 = arith.constant 0 : index
    %c0_24 = arith.constant 0 : index
    %74 = vector.load %arg4[%c0_23, %c0_24] : memref<1x32xf32, #tpu.memory_space<vmem>>, vector<1x32xf32>
    %75 = vector.broadcast %74 : vector<1x32xf32> to vector<8x32xf32>
    %76 = arith.addf %73, %75 : vector<8x32xf32>
    %c0_25 = arith.constant 0 : index
    %c0_26 = arith.constant 0 : index
    %c0_27 = arith.constant 0 : index
    %77 = vector.load %arg5[%c0_25, %c0_26, %c0_27] : memref<1x8x32xf32, #tpu.memory_space<vmem>>, vector<1x8x32xf32>
    %78 = vector.shape_cast %77 : vector<1x8x32xf32> to vector<8x32xf32>
    %79 = vector.shape_cast %76 : vector<8x32xf32> to vector<1x8x32xf32>
    tpu.vector_store %arg5[%c0_25, %c0_26, %c0_27], %79 {strides = array<i32>} : memref<1x8x32xf32, #tpu.memory_space<vmem>>, vector<1x8x32xf32>,
    return
  }
  func.func @transform_0(%arg0: i32) -> (i32, i32, i32) {
    %c0_i32 = arith.constant 0 : i32
    %c0_i32_0 = arith.constant 0 : i32
    %c0_i32_1 = arith.constant 0 : i32
    return %arg0, %c0_i32, %c0_i32_0 : i32, i32, i32
  }
  func.func @transform_1(%arg0: i32) -> (i32, i32) {
    %c0_i32 = arith.constant 0 : i32
    %c0_i32_0 = arith.constant 0 : i32
    %c0_i32_1 = arith.constant 0 : i32
    return %c0_i32, %c0_i32_0 : i32, i32
  }
  func.func @transform_2(%arg0: i32) -> (i32, i32) {
    %c0_i32 = arith.constant 0 : i32
    %c0_i32_0 = arith.constant 0 : i32
    %c0_i32_1 = arith.constant 0 : i32
    return %c0_i32, %c0_i32_0 : i32, i32
  }
  func.func @transform_3(%arg0: i32) -> (i32, i32) {
    %c0_i32 = arith.constant 0 : i32
    %c0_i32_0 = arith.constant 0 : i32
    %c0_i32_1 = arith.constant 0 : i32
    return %c0_i32, %c0_i32_0 : i32, i32
  }
  func.func @transform_4(%arg0: i32) -> (i32, i32, i32) {
    %c0_i32 = arith.constant 0 : i32
    %c0_i32_0 = arith.constant 0 : i32
    %c0_i32_1 = arith.constant 0 : i32
    return %arg0, %c0_i32, %c0_i32_0 : i32, i32, i32
  }
}

</mosaic_0001>

<bundles_post_ra>
// kernel: tpu_custom_call.1
= control target key start
LH: loop header
LB: loop body
LE: loop exit
PB: predicated region body
PF: predicated region fallthrough
CT: control target
= control target key end

     0   :  { %9 = vsyncpa [#allocation3], 0  ;;  %s1934_s0 = inlined_call_operand.hbm [shape: f32[2,8,32], index: 0, kind: input, shape index: {}]   ;;  %s1935_s1 = inlined_call_operand.hbm [shape: f32[32,96], index: 1, kind: input, shape index: {}]   ;;  %s1936_s2 = inlined_call_operand.hbm [shape: f32[32,32], index: 2, kind: input, shape index: {}]   ;;  %s1937_s3 = inlined_call_operand.vmem [shape: f32[1,32], index: 3, kind: input, shape index: {}]   ;;  %s1938_s4 = inlined_call_operand.hbm [shape: f32[2,8,32], index: 4, kind: output, shape index: {}]  }
   0x1   :  { %11 = vsyncpa [#allocation3 + $0x1], 0 }
   0x2   :  { %12 = vsyncpa [#allocation6], 0 }
   0x3   :  { %13 = vsyncpa [#allocation4], 0 }
   0x4   :  { %15 = vsyncpa [#allocation4 + $0x1], 0  ;;  %s1625_s15 = smov 0   ;;  %s1627_s16 = smov 0  }
   0x5   :  { %s1629_s17 = smov 0   ;;  %s1631_s18 = smov 0  }
   0x6 LB: > { %s1646_s19 = sadd.s32 4294967295, %s1575_s18   ;;  %s1186_s20 = sadd.s32 4294967294, %s1575_s18   ;;  %s1575_s18 = sphi %s1631_s18, %s1958_s18   ;;  %s1571_s17 = sphi %s1629_s17, %s1957_s17   ;;  %s1567_s16 = sphi %s1627_s16, %s1956_s16   ;;  %s1563_s15 = sphi %s1625_s15, %s1955_s15  }
   0x7   : > { %p41_p0 = scmp.ne.s32.totalorder %s1567_s16, %s1563_s15  ;;  %p1939_p1 = scmp.eq.s32.totalorder %s1646_s19, 0 }
   0x8   : > { %p134_p3 = scmp.eq.s32.totalorder %s1186_s20, 1  ;;  %p1187_p5 = scmp.ge.s32.totalorder %s1575_s18, 1 }
   0x9   : > { %p1655_p4 = por %p1939_p1, %p41_p0  ;;  %p141_p7 = scmp.lt.s32.totalorder %s1575_s18, 3 }
   0xa   : > { %p1660_p6 = por %p134_p3, %p41_p0  ;;  %s1577_s24 = smov [#allocation5]  }
   0xb   : > { %s1942_s21 = scalar_select %p1655_p4, 1, 0 }
   0xc   : > { %s1943_s22 = scalar_select %p1660_p6, 1, 0 }
   0xd   : > { %p1665_p8 = pnand %p1187_p5, %p141_p7  ;;  %s153_s25 = sshll.u32 %s1577_s24, 4  ;;  %s1669_s25 = int_to_ptr.vmem [resolvable:$true] %s153_s25 }
   0xe   : > { %s1578_s27 = smov [#allocation7]   ;;  %s1419_s5 = scalar_lea.hbm %s1935_s1, 512 }
   0xf   : > { %p1329_p9 = pneg %p1665_p8  ;;  %s166_s28 = sshll.u32 %s1578_s27, 4  ;;  %s1680_s28 = int_to_ptr.vmem [resolvable:$true] %s166_s28 }
  0x10   : > { %p1420_p12 = scmp.ne.s32.totalorder %s1935_s1, %s1419_s5  ;;  %p1426_p5 = scmp.lt.u32.totalorder %s1419_s5, %s1935_s1 }
  0x11   : > { %p1676_p11 = pnand %p1329_p9, %p1939_p1 }
  0x13   : > { %p1421_p13 = pneg %p1676_p11 }
  0x15   : > { %p1422_p0 = pnand %p1421_p13, %p1420_p12 }
  0x17   : > { %p1423_p3 = pneg %p1422_p0 }
  0x19   : > { %p1428_p7 = pnand %p1426_p5, %p1423_p3 }
  0x1b   : > { %1431 = shalt.err (!%p1428_p7)
}
  0x1c   : > { %s1432_s10 = scalar_lea.vmem %s1669_s25, 512  ;;  %p1440_p2 = scmp.lt.s32.totalorder %s1669_s25, %s1669_s25 }
  0x1d   : > { %p1433_p9 = scmp.ne.s32.totalorder %s1669_s25, %s1432_s10  ;;  %p1441_p12 = scmp.lt.s32.totalorder %s1432_s10, %s1432_s10 }
  0x1f   : > { %p1435_p10 = pnand %p1433_p9, %p1421_p13  ;;  %p1442_p0 = por %p1441_p12, %p1440_p2 }
  0x21   : > { %p1436_p1 = pneg %p1435_p10 }
  0x23   : > { %p1443_p6 = pnand %p1442_p0, %p1436_p1 }
  0x25   : > { %1446 = shalt.err (!%p1443_p6)
}
  0x26   : > { %s1579_s11 = smov 128   ;;  %s1580_s12 = smov 8  }
  0x27   : > { %1332 = dma.hbm_to_vmem [thread:$0]  (!%p1676_p11), %s1935_s1, 512, %s1669_s25, [#allocation6], %s1579_s11, %s1579_s11, %s1580_s12  }
  0x28   : > { %s1447_s27 = scalar_lea.hbm %s1936_s2, 512 }
  0x29   : > { %p1448_p2 = scmp.ne.s32.totalorder %s1936_s2, %s1447_s27  ;;  %p1454_p10 = scmp.lt.u32.totalorder %s1447_s27, %s1936_s2 }
  0x2b   : > { %p1450_p1 = pnand %p1448_p2, %p1421_p13 }
  0x2d   : > { %p1451_p6 = pneg %p1450_p1 }
  0x2f   : > { %p1456_p3 = pnand %p1454_p10, %p1451_p6 }
  0x31   : > { %1459 = shalt.err (!%p1456_p3)
}
  0x32   : > { %s1460_s25 = scalar_lea.vmem %s1680_s28, 512  ;;  %p1468_p12 = scmp.lt.s32.totalorder %s1680_s28, %s1680_s28 }
  0x33   : > { %p1461_p5 = scmp.ne.s32.totalorder %s1680_s28, %s1460_s25  ;;  %p1469_p0 = scmp.lt.s32.totalorder %s1460_s25, %s1460_s25 }
  0x35   : > { %p1463_p7 = pnand %p1461_p5, %p1421_p13  ;;  %p1470_p2 = por %p1469_p0, %p1468_p12 }
  0x37   : > { %p1464_p9 = pneg %p1463_p7 }
  0x39   : > { %p1471_p1 = pnand %p1470_p2, %p1464_p9 }
  0x3b   : > { %1474 = shalt.err (!%p1471_p1)
}
  0x3c   : > { %1335 = dma.hbm_to_vmem [thread:$0]  (!%p1676_p11), %s1936_s2, 512, %s1680_s28, [#allocation6], %s1579_s11, %s1579_s11, %s1580_s12  }
  0x3d   : > { %s1735_s9 = sadd.s32 1, %s1575_s18   ;;  %s28_s26 = sadd.s32 1, %s1571_s17 }
  0x3e   : > { %s25_s10 = ssub.s32 %s1575_s18, %s1735_s9  ;;  %p35_p13 = scmp.ne.s32.totalorder %s1571_s17, %s1567_s16 }
  0x3f   : > { %p26_p6 = scmp.eq.s32.totalorder %s25_s10, 0  ;;  %p36_p10 = scmp.eq.s32.totalorder %s1575_s18, 0 }
  0x40   : > { %p1946_p3 = scmp.eq.s32.totalorder %s1646_s19, 1  ;;  %p1346_p7 = scmp.lt.s32.totalorder %s1575_s18, 2 }
  0x41   : > { %s1751_s14 = scalar_select %p26_p6, %s1571_s17, %s28_s26  }
  0x42   : > { %p1745_p5 = por %p1946_p3, %p35_p13  ;;  %p37_p9 = por %p36_p10, %p35_p13 }
  0x43   : > { %s183_s20 = sand.u32 1, %s1571_s17   ;;  %s1192_s28 = sshll.u32 %s1575_s18, 7 }
  0x44   : > { %s1947_s13 = scalar_select %p1745_p5, 1, 0 }
  0x45   : > { %s1191_s24 = sshll.u32 %s183_s20, 3  ;;  %s1758_s27 = scalar_lea.hbm %s1934_s0, %s1192_s28 }
  0x46   : > { %s187_s29 = scalar_lea.vmem [#allocation2], %s1191_s24  ;;  %p1762_p11 = pnand %p1346_p7, %p37_p9 }
  0x47   : > { %s194_s30 = sshll.u32 %s187_s29, 4  ;;  %s184_s6 = scalar_lea.sflag [#allocation3], %s183_s20  ;;  %s1760_s30 = int_to_ptr.vmem [resolvable:$true] %s194_s30 }
  0x48   : > { %s1475_s25 = scalar_lea.hbm %s1758_s27, 128  ;;  %p1477_p0 = pneg %p1762_p11 }
  0x49   : > { %p1476_p12 = scmp.ne.s32.totalorder %s1758_s27, %s1475_s25  ;;  %s1480_s26 = scalar_lea.hbm %s1934_s0, 256 }
  0x4a   : > { %p1481_p13 = scmp.lt.u32.totalorder %s1758_s27, %s1934_s0  ;;  %p1482_p6 = scmp.lt.u32.totalorder %s1480_s26, %s1475_s25 }
  0x4b   : > { %p1478_p2 = pnand %p1477_p0, %p1476_p12  ;;  %p1484_p3 = scmp.lt.u32.totalorder %s1475_s25, %s1758_s27 }
  0x4c   : > { %p1483_p10 = por %p1482_p6, %p1481_p13 }
  0x4d   : > { %p1479_p1 = pneg %p1478_p2 }
  0x4e   : > { %p1485_p7 = por %p1484_p3, %p1483_p10 }
  0x50   : > { %p1486_p9 = pnand %p1485_p7, %p1479_p1 }
  0x52   : > { %1489 = shalt.err (!%p1486_p9)
}
  0x53   : > { %s1490_s20 = scalar_lea.vmem %s1760_s30, 128  ;;  %s1581_s28 = smov [#allocation2]  }
  0x54   : > { %p1491_p12 = scmp.ne.s32.totalorder %s1760_s30, %s1490_s20  ;;  %s1495_s11 = sshll.u32 %s1581_s28, 4  ;;  %s1496_s11 = int_to_ptr.vmem [resolvable:$false] %s1495_s11 }
  0x55   : > { %s1497_s12 = scalar_lea.vmem %s1496_s11, 256  ;;  %p1498_p4 = scmp.lt.s32.totalorder %s1760_s30, %s1496_s11 }
  0x56   : > { %p1493_p2 = pnand %p1491_p12, %p1477_p0  ;;  %p1499_p13 = scmp.lt.s32.totalorder %s1497_s12, %s1490_s20 }
  0x58   : > { %p1494_p5 = pneg %p1493_p2  ;;  %p1500_p6 = por %p1499_p13, %p1498_p4 }
  0x5a   : > { %p1501_p10 = pnand %p1500_p6, %p1494_p5 }
  0x5c   : > { %1504 = shalt.err (!%p1501_p10)
}
  0x5d   : > { %1339 = dma.hbm_to_vmem [thread:$0]  (!%p1762_p11), %s1758_s27, 128, %s1760_s30, %s184_s6  }
  0x5e   : > { %203 = sbr.rel (%p1665_p8) target bundleno = 1755 (0x6db), region = 36  ;;  %s1794_s29 = sand.u32 (!%p1665_p8), 1, %s1567_s16  }
  0x5f   : > { %s1194_s25 = sshll.u32 (!%p1665_p8), %s1794_s29, 3  ;;  %s206_s7 = scalar_lea.sflag (!%p1665_p8), [#allocation3], %s1794_s29 }
  0x60   : > { %s209_s8 = scalar_lea.vmem (!%p1665_p8), [#allocation2], %s1194_s25  ;;  %p1949_p4 = scmp.ne.s32.totalorder (!%p1665_p8), %s1942_s21, 0 }
  0x65   : > { %1550 = dma.done.wait (%p1949_p4), %s206_s7, 128  }
  0x66   : > { %1552 = vsyncadd (%p1949_p4), %s206_s7, 4294967168  ;;  %p1950_p5 = scmp.eq.s32.totalorder %s1646_s19, 0 }
  0x68   : > { %1554 = dma.done.wait (%p1950_p5), [#allocation6], 1024   ;;  %p1951_p8 = pmov %p1950_p5 }
  0x69   : > { %v1582_v0 = vmov 0.0|0.0   ;;  %vm1583_vm0 = vmmov 0   ;;  %v1584_v1 = vmov 0.0   ;;  %v243_v2 = vld [vmem:[#allocation5] sm:$0xff]  ;;  %v244_v3 = vld [vmem:[#allocation5 + $0x8] sm:$0xff]  ;;  %v245_v4 = vld [vmem:[#allocation5 + $0x10] sm:$0xff] }
  0x6a   : > { %1556 = vsyncadd (%p1951_p8), [#allocation6], 4294966272  ;;  %1305 = vmatprep.subr.bf16.mxu0 %v1582_v0  ;;  %1251 = vmatprep.mubr.msk.f32.mxu0 %vm1583_vm0, %v1584_v1  ;;  %v1306_v5 = vpack.c.bf16 %v244_v3, %v243_v2  ;;  %v246_v6 = vld [vmem:[#allocation5 + $0x18] sm:$0xff]  ;;  %vm247_vm1 = vcmask 261120   ;;  %s1585_s21 = smov 64   ;;  %s1586_s23 = smov 96  }
  0x6b   : > { %1254 = vmatprep.subr.mxu1 %v1584_v1  ;;  %1256 = vmatprep.mubr.msk.f32.mxu1 %vm1583_vm0, %v1584_v1  ;;  %v1309_v7 = vpack.c.bf16 %v246_v6, %v245_v4  ;;  %v242_v8 = vld [vmem:[%s209_s8] sm:$0xff]  ;;  %s1587_s27 = smov 88   ;;  %s1588_s30 = smov 120   ;;  %vm324_vm2 = vcmask 64512   ;;  %v998_v57 = vld [vmem:[#allocation7] sm:$0xff]  ;;  %v999_v58 = vld [vmem:[#allocation7 + $0x8] sm:$0xff] }
  0x6c   : > { %1307 = vmatpush3.bf16.msra.mxu0 %v1306_v5  ;;  %s1589_s5 = smov 80   ;;  %s1590_s6 = smov 112   ;;  %v1312_v60 = vpack.c.bf16 %v999_v58, %v998_v57  ;;  %v1000_v61 = vld [vmem:[#allocation7 + $0x10] sm:$0xff]  ;;  %v1001_v62 = vld [vmem:[#allocation7 + $0x18] sm:$0xff]  ;;  %vm994_vm3 = vcmask 130048   ;;  %vm996_vm4 = vcmask 195584  }
  0x6d   : > { %1308 = vmatprep.subr.bf16.mxu0 %v1582_v0  ;;  %s1591_s26 = smov 72   ;;  %s1592_s10 = smov 104   ;;  %v1315_v2 = vpack.c.bf16 %v1001_v62, %v1000_v61 }
  0x6e   : > { %s1593_s24 = smov 56   ;;  %s1594_s20 = smov 40  }
  0x6f   : > { %s1595_s28 = smov 48   ;;  %s1596_s11 = smov 8  }
  0x70   : > { %1310 = vmatpush3.bf16.msra.mxu0 %v1309_v7  ;;  %s1597_s12 = smov 16   ;;  %s1598_s7 = smov 24  }
  0x71   : > { %1274 = vmatprep.subr.mxu0 %v1584_v1  ;;  %p1952_p0 = scmp.ne.s32.totalorder %s1947_s13, 0 }
  0x73   : > { %1252 = vmatmul.mubr.msk.f32.vlgmr.msra.gmra.mrb[0].mxu0 %vm247_vm1, %v242_v8 }
  0x74   : > { %1276 = vmatprep.mubr.msk.f32.mxu0 %vm1583_vm0, %v1584_v1 }
 0x146   : > { %v1819_v9 = vpop.f32.mrb[0].mxu0 }
 0x147   : > { %408 = vrot.lane.b32.xlu1 %v1819_v9, %s1585_s21  ;;  %322 = vrot.lane.b32.xlu0 %v1819_v9, %s1586_s23  ;;  %v1253_v10 = vpop.f32.mrb[1].mxu0  ;;  %s1214_s23 = sshll.u32 %s1646_s19, 7 }
 0x14b   : > { %488 = vrot.lane.b32.xlu1 %v1819_v9, %s1587_s27  ;;  %s241_s27 = scalar_lea.vmem [#allocation8], %s1194_s25  ;;  %s1599_s25 = smov [#allocation8]  }
 0x14f   : > { %486 = vrot.lane.b32.xlu1 %v1819_v9, %s1588_s30  ;;  %s1097_s30 = sshll.u32 %s241_s27, 4  ;;  %s1891_s30 = int_to_ptr.vmem [resolvable:$true] %s1097_s30 }
 0x150   : > { %s1505_s19 = scalar_lea.vmem %s1891_s30, 128 }
 0x151   : > { %p1506_p11 = scmp.ne.s32.totalorder %s1891_s30, %s1505_s19 }
 0x153   : > { %653 = vrot.lane.b32.xlu1 %v1819_v9, %s1589_s5  ;;  %p1507_p1 = pnand %p1506_p11, %p1952_p0 }
 0x155   : > { %p1508_p3 = pneg %p1507_p1 }
 0x157   : > { %651 = vrot.lane.b32.xlu1 %v1819_v9, %s1590_s6 }
 0x15b   : > { %818 = vrot.lane.b32.xlu1 %v1819_v9, %s1591_s26  ;;  %s1889_s26 = scalar_lea.hbm %s1938_s4, %s1214_s23 }
 0x15f   : > { %816 = vrot.lane.b32.xlu1 %v1819_v9, %s1592_s10  ;;  %s1084_s10 = scalar_lea.sflag [#allocation4], %s1794_s29 }
 0x1b9   : > { %v409_v11 = vpop.permute.xlu1 %408  ;;  %v323_v12 = vpop.permute.xlu0 %322 }
 0x1ba   : > { %1255 = vmatpush3.xpose.msk.msra.mxu1 %vm324_vm2, %v323_v12 }
 0x1bb   : > { %1259 = vmatprep.subr.mxu1 %v1584_v1 }
 0x1bd   : > { %v489_v13 = vpop.permute.xlu1 %488  ;;  %1257 = vmatmul.mubr.msk.f32.vlgmr.msra.gmra.mrb[0].mxu1 %vm324_vm2, %v1819_v9 }
 0x1be   : > { %1260 = vmatpush3.msra.mxu1 %v409_v11  ;;  %1261 = vmatprep.mubr.msk.f32.mxu1 %vm1583_vm0, %v1584_v1 }
 0x1bf   : > { %1264 = vmatprep.subr.mxu1 %v1584_v1 }
 0x1c1   : > { %v487_v14 = vpop.permute.xlu1 %486 }
 0x1c5   : > { %v654_v15 = vpop.permute.xlu1 %653 }
 0x1c6   : > { %1275 = vmatpush3.xpose.msk.msra.mxu0 %vm324_vm2, %v654_v15 }
 0x1c7   : > { %1284 = vmatprep.subr.mxu0 %v1584_v1 }
 0x1c9   : > { %v652_v16 = vpop.permute.xlu1 %651 }
 0x1ca   : > { %1277 = vmatmul.mubr.msk.f32.vlgmr.msra.gmra.mrb[2].mxu0 %vm324_vm2, %v652_v16 }
 0x1cb   : > { %1286 = vmatprep.mubr.msk.f32.mxu0 %vm1583_vm0, %v1584_v1 }
 0x1cd   : > { %v819_v17 = vpop.permute.xlu1 %818 }
 0x1ce   : > { %1285 = vmatpush3.xpose.msk.msra.mxu0 %vm324_vm2, %v819_v17 }
 0x1cf   : > { %1311 = vmatprep.subr.bf16.mxu0 %v1582_v0 }
 0x1d1   : > { %v817_v18 = vpop.permute.xlu1 %816 }
 0x1d2   : > { %1287 = vmatmul.mubr.msk.f32.vlgmr.msra.gmra.mrb[4].mxu0 %vm324_vm2, %v817_v18 }
 0x1d3   : > { %1302 = vmatprep.mubr.msk.f32.mxu0 %vm1583_vm0, %v1584_v1  ;;  %1313 = vmatpush3.bf16.msra.mxu0 %v1312_v60 }
 0x1d4   : > { %1314 = vmatprep.subr.bf16.mxu0 %v1582_v0 }
 0x1d7   : > { %1316 = vmatpush3.bf16.msra.mxu0 %v1315_v2 }
 0x290   : > { %v395_v19 = vpop.f32.mrb[0].mxu1 }
 0x291   : > { %v1258_v20 = vpop.f32.mrb[1].mxu1  ;;  %v399_v21 = vsel %vm324_vm2, %v395_v19, -inf }
 0x292   : > { %400 = vmax.xlane.f32.xlu0 %v399_v21 }
 0x29d   : > { %v725_v22 = vpop.f32.mrb[2].mxu0 }
 0x29e   : > { %v1278_v23 = vpop.f32.mrb[3].mxu0  ;;  %v729_v26 = vsel %vm324_vm2, %v725_v22, -inf }
 0x2a5   : > { %v890_v24 = vpop.f32.mrb[4].mxu0 }
 0x2a6   : > { %v1288_v25 = vpop.f32.mrb[5].mxu0  ;;  %v894_v27 = vsel %vm324_vm2, %v890_v24, -inf }
 0x2a8   : > { %573 = vrot.lane.b32.xlu0 %v1819_v9, %s1593_s24  ;;  %s1509_s24 = sshll.u32 %s1599_s25, 4  ;;  %s1510_s24 = int_to_ptr.vmem [resolvable:$false] %s1509_s24 }
 0x2a9   : > { %p1512_p7 = scmp.lt.s32.totalorder %s1891_s30, %s1510_s24 }
 0x2c7   : > { %730 = vmax.xlane.f32.xlu0 %v729_v26 }
 0x2cb   : > { %895 = vmax.xlane.f32.xlu0 %v894_v27 }
 0x2e1   : > { %903 = vrot.lane.b32.xlu0 %v1819_v9, %s1594_s20  ;;  %s1511_s20 = scalar_lea.vmem %s1510_s24, 256 }
 0x2e2   : > { %p1513_p9 = scmp.lt.s32.totalorder %s1511_s20, %s1505_s19 }
 0x2e4   : > { %p1514_p12 = por %p1513_p9, %p1512_p7 }
 0x2e6   : > { %p1515_p2 = pnand %p1514_p12, %p1508_p3 }
 0x31f   : > { %v401_v28 = vpop.xlane.xlu0 %400 }
 0x320   : > { %v402_v29 = vsub.f32 %v395_v19, %v401_v28 }
 0x322   : > { %v403_v30 = vmul.f32 1.442695, %v402_v29 }
 0x323   : > { %v574_v32 = vpop.permute.xlu0 %573 }
 0x324   : > { %1403 = vpow2.f32 %v403_v30 }
 0x32e   : > { %v1404_v31 = vpop.eup %1403 }
 0x32f   : > { %1262 = vmatmul.mubr.msk.f32.vlgmr.msra.gmra.mrb[2].mxu1 %vm324_vm2, %v1404_v31  ;;  %v405_v55 = vsel %vm324_vm2, %v1404_v31, 0.0 }
 0x330   : > { %1265 = vmatpush3.xpose.msk.msra.mxu1 %vm324_vm2, %v489_v13  ;;  %1266 = vmatprep.mubr.msk.f32.mxu1 %vm1583_vm0, %v1584_v1 }
 0x331   : > { %1269 = vmatprep.subr.mxu1 %v1584_v1 }
 0x333   : > { %1267 = vmatmul.mubr.msk.f32.vlgmr.msra.gmra.mrb[4].mxu1 %vm324_vm2, %v487_v14 }
 0x334   : > { %1270 = vmatpush3.msra.mxu1 %v574_v32  ;;  %1271 = vmatprep.mubr.msk.f32.mxu1 %vm1583_vm0, %v1584_v1 }
 0x335   : > { %1279 = vmatprep.subr.mxu1 %v1584_v1 }
 0x354   : > { %v731_v38 = vpop.xlane.xlu0 %730 }
 0x355   : > { %v732_v39 = vsub.f32 %v725_v22, %v731_v38  ;;  %v1211_v22 = vld [vmem:[%s1937_s3] ss:$0 sm:$0xff] }
 0x357   : > { %v733_v40 = vmul.f32 1.442695, %v732_v39 }
 0x358   : > { %v896_v43 = vpop.xlane.xlu0 %895 }
 0x359   : > { %1405 = vpow2.f32 %v733_v40  ;;  %v897_v44 = vsub.f32 %v890_v24, %v896_v43 }
 0x35b   : > { %v898_v47 = vmul.f32 1.442695, %v897_v44 }
 0x35c   : > { %v904_v53 = vpop.permute.xlu0 %903 }
 0x363   : > { %v1406_v41 = vpop.eup %1405 }
 0x364   : > { %v735_v42 = vsel %vm324_vm2, %v1406_v41, 0.0 }
 0x402   : > { %v1860_v33 = vpop.f32.mrb[2].mxu1 }
 0x403   : > { %v1263_v34 = vpop.f32.mrb[3].mxu1 }
 0x406   : > { %v560_v35 = vpop.f32.mrb[4].mxu1 }
 0x407   : > { %v1268_v36 = vpop.f32.mrb[5].mxu1  ;;  %v564_v37 = vsel %vm324_vm2, %v560_v35, -inf }
 0x408   : > { %565 = vmax.xlane.f32.xlu1 %v564_v37 }
 0x419   : > { %738 = vrot.lane.b32.xlu1 %v1819_v9, %s1595_s28 }
 0x43d   : > { %736 = vadd.xlane.f32.xlu1 %v735_v42 }
 0x495   : > { %v566_v45 = vpop.xlane.xlu1 %565 }
 0x496   : > { %v567_v46 = vsub.f32 %v560_v35, %v566_v45 }
 0x498   : > { %v568_v48 = vmul.f32 1.442695, %v567_v46 }
 0x499   : > { %v739_v50 = vpop.permute.xlu1 %738 }
 0x49a   : > { %1407 = vpow2.f32 %v568_v48 }
 0x49b   : > { %1409 = vpow2.f32 %v898_v47 }
 0x4a4   : > { %v1408_v49 = vpop.eup %1407 }
 0x4a5   : > { %1272 = vmatmul.mubr.msk.f32.vlgmr.msra.gmra.mrb[6].mxu1 %vm324_vm2, %v1408_v49  ;;  %v570_v51 = vsel %vm324_vm2, %v1408_v49, 0.0  ;;  %v1410_v52 = vpop.eup %1409 }
 0x4a6   : > { %1280 = vmatpush3.msra.mxu1 %v739_v50  ;;  %571 = vadd.xlane.f32.xlu0 %v570_v51  ;;  %v900_v54 = vsel %vm324_vm2, %v1410_v52, 0.0 }
 0x4a7   : > { %1281 = vmatprep.mubr.msk.f32.mxu1 %vm1583_vm0, %v1584_v1  ;;  %1289 = vmatprep.subr.mxu1 %v1584_v1 }
 0x4a9   : > { %1282 = vmatmul.mubr.msk.f32.vlgmr.msra.gmra.mrb[8].mxu1 %vm324_vm2, %v1406_v41 }
 0x4aa   : > { %1290 = vmatpush3.msra.mxu1 %v904_v53  ;;  %901 = vadd.xlane.f32.xlu0 %v900_v54 }
 0x4ab   : > { %1291 = vmatprep.mubr.msk.f32.mxu1 %vm1583_vm0, %v1584_v1 }
 0x4ad   : > { %1292 = vmatmul.mubr.msk.f32.vlgmr.msra.gmra.mrb[10].mxu1 %vm324_vm2, %v1410_v52 }
 0x4ae   : > { %406 = vadd.xlane.f32.xlu0 %v405_v55 }
 0x4ca   : > { %v737_v59 = vpop.xlane.xlu1 %736 }
 0x533   : > { %v572_v56 = vpop.xlane.xlu0 %571 }
 0x534   : > { %1411 = vrcp.f32 %v572_v56 }
 0x535   : > { %1413 = vrcp.f32 %v737_v59 }
 0x537   : > { %v902_v63 = vpop.xlane.xlu0 %901 }
 0x538   : > { %1415 = vrcp.f32 %v902_v63 }
 0x53b   : > { %v407_v13 = vpop.xlane.xlu0 %406 }
 0x53c   : > { %1417 = vrcp.f32 %v407_v13 }
 0x53e   : > { %v1412_v1 = vpop.eup %1411 }
 0x53f   : > { %v1414_v6 = vpop.eup %1413 }
 0x542   : > { %v1416_v10 = vpop.eup %1415 }
 0x546   : > { %v1418_v14 = vpop.eup %1417 }
 0x547   : > { %v485_v16 = vmul.f32 %v1418_v14, %v1860_v33 }
 0x578   : > { %v645_v3 = vpop.f32.mrb[6].mxu1 }
 0x579   : > { %v650_v4 = vmul.f32 %v1412_v1, %v645_v3  ;;  %v1273_v5 = vpop.f32.mrb[7].mxu1 }
 0x57b   : > { %982 = vrot.lane.b32.xlu0 %v650_v4, %s1596_s11 }
 0x57c   : > { %v810_v7 = vpop.f32.mrb[8].mxu1 }
 0x57d   : > { %v815_v8 = vmul.f32 %v1414_v6, %v810_v7  ;;  %v1283_v9 = vpop.f32.mrb[9].mxu1 }
 0x57f   : > { %986 = vrot.lane.b32.xlu1 %v815_v8, %s1597_s12 }
 0x580   : > { %v975_v0 = vpop.f32.mrb[10].mxu1 }
 0x581   : > { %v980_v11 = vmul.f32 %v1416_v10, %v975_v0  ;;  %v1293_v12 = vpop.f32.mrb[11].mxu1 }
 0x583   : > { %990 = vrot.lane.b32.xlu0 %v980_v11, %s1598_s7 }
 0x5ed   : > { %v983_v15 = vpop.permute.xlu0 %982 }
 0x5ee   : > { %v993_v18 = vsel %vm324_vm2, %v485_v16, %v983_v15 }
 0x5f1   : > { %v987_v17 = vpop.permute.xlu1 %986 }
 0x5f2   : > { %v995_v19 = vsel %vm994_vm3, %v993_v18, %v987_v17 }
 0x5f5   : > { %v991_v20 = vpop.permute.xlu0 %990 }
 0x5f6   : > { %v997_v21 = vsel %vm996_vm4, %v995_v19, %v991_v20 }
 0x5f7   : > { %1303 = vmatmul.mubr.msk.f32.vlgmr.msra.gmra.mrb[6].mxu0 %vm247_vm1, %v997_v21 }
 0x6ca   : > { %v1078_v23 = vpop.f32.mrb[6].mxu0 }
 0x6cb   : > { %v1079_v24 = vadd.f32 %v1211_v22, %v1078_v23  ;;  %v1304_v25 = vpop.f32.mrb[7].mxu0 }
 0x6cd   : > { %1082 = vst.msk [vmem:[%s241_s27] sm:$0xff] %vm247_vm1, %v1079_v24 }
 0x6ce   : > { %1518 = shalt.err (!%p1515_p2)
}
 0x6cf   : > { %s1519_s29 = scalar_lea.hbm %s1889_s26, 128  ;;  %s1523_s12 = scalar_lea.hbm %s1938_s4, 256 }
 0x6d0   : > { %p1520_p13 = scmp.ne.s32.totalorder %s1889_s26, %s1519_s29  ;;  %p1524_p4 = scmp.lt.u32.totalorder %s1889_s26, %s1938_s4 }
 0x6d1   : > { %p1525_p5 = scmp.lt.u32.totalorder %s1523_s12, %s1519_s29  ;;  %p1527_p11 = scmp.lt.u32.totalorder %s1519_s29, %s1889_s26 }
 0x6d2   : > { %p1521_p6 = pnand %p1520_p13, %p1952_p0 }
 0x6d3   : > { %p1526_p8 = por %p1525_p5, %p1524_p4 }
 0x6d4   : > { %p1522_p10 = pneg %p1521_p6 }
 0x6d5   : > { %p1528_p1 = por %p1527_p11, %p1526_p8 }
 0x6d7   : > { %p1529_p3 = pnand %p1528_p1, %p1522_p10 }
 0x6d9   : > { %1532 = shalt.err (!%p1529_p3)
}
 0x6da   : > { %1327 = dma.vmem_to_hbm [thread:$0]  (%p1952_p0), %s1891_s30, 128, %s1889_s26, %s1084_s10  }
 0x6db PF: > { %s1109_s21 = sand.u32 1, %s1563_s15   ;;  %p1953_p7 = scmp.ne.s32.totalorder %s1943_s22, 0 }
 0x6dc   : > { %p1954_p9 = scmp.ge.s32.totalorder %s1575_s18, 2  ;;  %s1110_s23 = scalar_lea.sflag [#allocation4], %s1109_s21 }
 0x6de   : > { %p1341_p12 = pnand %p1954_p9, %p1953_p7 }
 0x6e0   : > { %1558 = dma.done.wait (!%p1341_p12), %s1110_s23, 128  }
 0x6e1   : > { %1560 = vsyncadd (!%p1341_p12), %s1110_s23, 4294967168  ;;  %p18_p2 = scmp.ge.s32.totalorder %s1735_s9, 4   ;;  %s1955_s15 = smov %s1567_s16 }
 0x6e2   : > { %s1956_s16 = smov %s1571_s17  ;;  %s1957_s17 = smov %s1751_s14 }
 0x6e3   : > { %s1958_s18 = smov %s1735_s9  ;;  %20 = sbr.rel (!%p18_p2) target bundleno = 6 (0x6), region = 89 }
 0x6ea   :  { %1115 = vsyncpa [#allocation3], 1 }
 0x6eb   :  { %1117 = vsyncpa [#allocation3 + $0x1], 1 }
 0x6ec   :  { %1118 = vsyncpa [#allocation6], 1 }
 0x6ed   :  { %1119 = vsyncpa [#allocation4], 1 }
 0x6ee   :  { %1121 = vsyncpa [#allocation4 + $0x1], 1 }

</bundles_post_ra>
